<compile_context>
chip_gen: v6e
topology: v6e:2x2x1
jax: 0.10.0
libtpu: 0.0.40
codegen_flags: <defaults>
</compile_context>

<pallas_src>
import functools

import jax
import jax.numpy as jnp
from jax.experimental import pallas as pl
from jax.experimental.pallas import tpu as pltpu


def _round_up(a, m):
    return (a + m - 1) // m * m


def _sublane_multiple(dtype):
    # Rows per packed sublane tile: f32 -> 8, bf16/f16 -> 16, int8/fp8 -> 32.
    bits = jnp.dtype(dtype).itemsize * 8
    if bits >= 32:
        return 8
    if bits == 16:
        return 16
    return 32


def _num_tensorcores():
    # v7x exposes 2 TensorCores to one Pallas grid (sharded via "parallel"
    # dimension_semantics); v5e/v6e have a single TC per chip.
    try:
        kind = jax.devices()[0].device_kind.lower()
    except Exception:
        return 1
    return 2 if "v7" in kind else 1


def _pooler_kernel(x_ref, w_ref, b_ref, o_ref, *, compute_dtype):
    # x_ref: (TB, H) first-token rows (strided DMA from the (B, S*H) view)
    # w_ref: (H, H)  dense weight, pre-transposed (W^T), VMEM-resident
    # b_ref: (1, H)  dense bias
    # o_ref: (TB, H)
    x = x_ref[...]
    w = w_ref[...]
    if compute_dtype is not None:
        x = x.astype(compute_dtype)
        w = w.astype(compute_dtype)
    y = jnp.dot(x, w, preferred_element_type=jnp.float32)   # MXU, f32 accum
    y = jnp.tanh(y + b_ref[...].astype(jnp.float32))        # bias + tanh (EUP)
    o_ref[...] = y.astype(o_ref.dtype)


@functools.partial(
    jax.jit, static_argnames=("tile_b", "compute_dtype", "min_pallas_batch"))
def mobilebert_pooler(hidden_states, w_t, b, *, tile_b=1024,
                      compute_dtype=None, min_pallas_batch=0):
    """MobileBertPooler forward.

    hidden_states: (B, S, H); w_t: (H, H) == dense.weight.T; b: (H,).
    Returns tanh(hidden_states[:, 0, :] @ w_t + b) with shape (B, H).

    compute_dtype:    optional lower-precision MXU dtype (e.g. jnp.bfloat16);
                      accumulation / bias / tanh stay in f32.
    min_pallas_batch: below this many rows, fall back to a fused XLA dot
                      (pallas_call setup cost dominates tiny batches).
                      0 disables the fallback (default).
    """
    B, S, H = hidden_states.shape
    out_dtype = hidden_states.dtype

    if B < min_pallas_batch:
        x = hidden_states[:, 0, :]
        return jnp.tanh(
            jnp.dot(x, w_t, preferred_element_type=jnp.float32) + b
        ).astype(out_dtype)

    # Fuse the first-token slice: view hidden_states as (B, S*H) (free reshape)
    # and let the activation BlockSpec grab columns [0, H) of each row-tile —
    # exactly token 0 — as a single strided HBM read.
    if H % 128 == 0:
        x2d = hidden_states.reshape(B, S * H)
    else:
        # Lane-alignment fallback: block last dim must be a multiple of 128 or
        # the full array dim, so materialize the slice instead.
        x2d = hidden_states[:, 0, :]

    # Row tiling: sublane-aligned for the compute dtype, as large as the batch
    # allows (op is HBM/overhead-bound; big tiles amortize per-step cost).
    sub = _sublane_multiple(out_dtype if compute_dtype is None else compute_dtype)
    tb = max(min(tile_b, _round_up(B, sub)), sub)
    tb = _round_up(tb, sub)

    # v7x: pick tb so the parallel grid is a multiple of the TC count
    # (balanced megacore sharding); no-op on single-TC v5e/v6e.
    n_cores = _num_tensorcores()
    if n_cores > 1 and B > n_cores * sub:
        n_blocks = _round_up(pl.cdiv(B, tb), n_cores)
        tb = _round_up(pl.cdiv(B, n_blocks), sub)

    grid = (pl.cdiv(B, tb),)
    itemsize = jnp.dtype(out_dtype).itemsize
    cost = pl.CostEstimate(
        flops=2 * B * H * H,
        transcendentals=B * H,
        bytes_accessed=(2 * B * H + H * H + H) * itemsize,
    )

    kernel = functools.partial(_pooler_kernel, compute_dtype=compute_dtype)

    return pl.pallas_call(
        kernel,
        out_shape=jax.ShapeDtypeStruct((B, H), out_dtype),
        grid_spec=pltpu.PrefetchScalarGridSpec(
            num_scalar_prefetch=0,
            grid=grid,
            in_specs=[
                # First-token rows: block (i, 0) over the (B, S*H) view ->
                # columns [0, H) of row-tile i. Partial last block is masked on
                # the output store, so no jnp.pad / out[:B] passes are needed.
                pl.BlockSpec((tb, H), lambda i: (i, 0)),
                # W^T and bias never change across the grid: single-buffered,
                # VMEM-resident (no dead second buffer).
                pl.BlockSpec((H, H), lambda i: (0, 0),
                             pipeline_mode=pl.Buffered(1)),
                pl.BlockSpec((1, H), lambda i: (0, 0),
                             pipeline_mode=pl.Buffered(1)),
            ],
            out_specs=pl.BlockSpec((tb, H), lambda i: (i, 0)),
        ),
        compiler_params=pltpu.CompilerParams(
            dimension_semantics=("parallel",)),
        cost_estimate=cost,
    )(x2d, w_t, b.reshape(1, H))


def reference(hidden_states, w_t, b):
    return jnp.tanh(hidden_states[:, 0, :] @ w_t + b)


if __name__ == "__main__":
    # Small shapes consistent with the module (hidden_size=512 is the default).
    B, S, H = 2, 8, 512

    key = jax.random.PRNGKey(0)
    k_h, k_w, k_b = jax.random.split(key, 3)

    hidden_states = jax.random.normal(k_h, (B, S, H), dtype=jnp.float32)

    # Deterministic synthetic parameters (not a checkpoint load).
    # nn.Linear(hidden_size, hidden_size): weight (H, H), bias (H,). Pass W^T.
    w = jax.random.normal(k_w, (H, H), dtype=jnp.float32) * (1.0 / jnp.sqrt(H))
    w_t = w.T                                        # (H, H)
    b = jax.random.normal(k_b, (H,), dtype=jnp.float32) * 0.02

    out = mobilebert_pooler(hidden_states, w_t, b)
    out = jax.block_until_ready(out)

    ref = reference(hidden_states, w_t, b)
    assert out.shape == (B, H)
    assert jnp.allclose(out, ref, atol=1e-4, rtol=1e-4), "mismatch vs reference"

    print("KERNEL_OK")
</pallas_src>

<mosaic_0001>
module attributes {stable_mosaic.version = 11 : i64} {
  func.func @_pooler_kernel(%arg0: i32, %arg1: memref<8x512xf32, #tpu.memory_space<vmem>>, %arg2: memref<512x512xf32, #tpu.memory_space<vmem>>, %arg3: memref<1x512xf32, #tpu.memory_space<vmem>>, %arg4: memref<8x512xf32, #tpu.memory_space<vmem>>) attributes {dimension_semantics = [#tpu.dimension_semantics<parallel>], iteration_bounds = array<i64: 1>, scalar_prefetch = 0 : i64, scratch_operands = 0 : i64, tpu.core_type = #tpu.core_type<tc>, window_params = [{transform_indices = @transform_0, window_bounds = array<i64: 8, 512>}, {pipeline_mode = #tpu.pipeline_mode<synchronous>, transform_indices = @transform_1, window_bounds = array<i64: 512, 512>}, {pipeline_mode = #tpu.pipeline_mode<synchronous>, transform_indices = @transform_2, window_bounds = array<i64: 1, 512>}, {transform_indices = @transform_3, window_bounds = array<i64: 8, 512>}]} {
    %c0 = arith.constant 0 : index
    %c0_0 = arith.constant 0 : index
    %0 = vector.load %arg1[%c0, %c0_0] : memref<8x512xf32, #tpu.memory_space<vmem>>, vector<8x512xf32>
    %c0_1 = arith.constant 0 : index
    %c0_2 = arith.constant 0 : index
    %1 = vector.load %arg2[%c0_1, %c0_2] : memref<512x512xf32, #tpu.memory_space<vmem>>, vector<512x512xf32>
    %cst = arith.constant dense<0.000000e+00> : vector<8x512xf32>
    %2 = tpu.matmul %0, %1, %cst {dimension_numbers = #tpu.dot_dimension_numbers<[1], [0], [0], [1], [0, 0, 1, 1], [], []>} : vector<8x512xf32>, vector<512x512xf32>, vector<8x512xf32> -> vector<8x512xf32>
    %c0_3 = arith.constant 0 : index
    %c0_4 = arith.constant 0 : index
    %3 = vector.load %arg3[%c0_3, %c0_4] : memref<1x512xf32, #tpu.memory_space<vmem>>, vector<1x512xf32>
    %4 = vector.broadcast %3 : vector<1x512xf32> to vector<8x512xf32>
    %5 = arith.addf %2, %4 : vector<8x512xf32>
    %6 = math.tanh %5 : vector<8x512xf32>
    %c0_5 = arith.constant 0 : index
    %c0_6 = arith.constant 0 : index
    %7 = vector.load %arg4[%c0_5, %c0_6] : memref<8x512xf32, #tpu.memory_space<vmem>>, vector<8x512xf32>
    tpu.vector_store %arg4[%c0_5, %c0_6], %6 {strides = array<i32>} : memref<8x512xf32, #tpu.memory_space<vmem>>, vector<8x512xf32>,
    return
  }
  func.func @transform_0(%arg0: i32) -> (i32, i32) {
    %c0_i32 = arith.constant 0 : i32
    %c0_i32_0 = arith.constant 0 : i32
    return %arg0, %c0_i32 : i32, i32
  }
  func.func @transform_1(%arg0: i32) -> (i32, i32) {
    %c0_i32 = arith.constant 0 : i32
    %c0_i32_0 = arith.constant 0 : i32
    %c0_i32_1 = arith.constant 0 : i32
    return %c0_i32, %c0_i32_0 : i32, i32
  }
  func.func @transform_2(%arg0: i32) -> (i32, i32) {
    %c0_i32 = arith.constant 0 : i32
    %c0_i32_0 = arith.constant 0 : i32
    %c0_i32_1 = arith.constant 0 : i32
    return %c0_i32, %c0_i32_0 : i32, i32
  }
  func.func @transform_3(%arg0: i32) -> (i32, i32) {
    %c0_i32 = arith.constant 0 : i32
    %c0_i32_0 = arith.constant 0 : i32
    return %arg0, %c0_i32 : i32, i32
  }
}

</mosaic_0001>

<bundles_post_ra>
// kernel: mobilebert_pooler.1
= control target key start
LH: loop header
LB: loop body
LE: loop exit
PB: predicated region body
PF: predicated region fallthrough
CT: control target
= control target key end

     0   :  { %8 = vsyncpa [#allocation4], 0  ;;  %s884_s0 = inlined_call_operand.vmem [shape: f32[2,4096], index: 0, kind: input, shape index: {}]   ;;  %s885_s1 = inlined_call_operand.hbm [shape: f32[512,512], index: 1, kind: input, shape index: {}]   ;;  %s886_s2 = inlined_call_operand.vmem [shape: f32[1,512], index: 2, kind: input, shape index: {}]   ;;  %s887_s3 = inlined_call_operand.hbm [shape: f32[2,512], index: 3, kind: output, shape index: {}]  }
   0x1   :  { %9 = vsyncpa [#allocation5], 0  ;;  %v40_v0 = vld [vmem:[%s884_s0] sm:$0xff]  ;;  %s812_s14 = smov [#allocation3]  }
   0x2   :  { %41 = vst [vmem:[#allocation2 + $0x10] sm:$0xff] %v40_v0  ;;  %s50_s15 = sshll.u32 %s812_s14, 4  ;;  %s51_s15 = int_to_ptr.vmem [resolvable:$true] %s50_s15 }
   0x3   :  { %s776_s16 = scalar_lea.vmem %s51_s15, 32768  ;;  %p781_p1 = scmp.lt.s32.totalorder %s51_s15, %s51_s15 }
   0x4   :  { %p777_p0 = scmp.ne.s32.totalorder %s51_s15, %s776_s16  ;;  %p782_p2 = scmp.lt.s32.totalorder %s776_s16, %s776_s16 }
   0x6   :  { %p783_p3 = por %p782_p2, %p781_p1 }
   0x8   :  { %p784_p4 = pnand %p783_p3, %p777_p0 }
   0xa   :  { %787 = shalt.err (!%p784_p4)
}
   0xb   :  { %s813_s17 = smov 512   ;;  %s814_s18 = smov 32  }
   0xc   :  { %56 = dma.hbm_to_vmem [thread:$0]  %s885_s1, 32768, %s51_s15, [#allocation4], %s813_s17, %s813_s17, %s814_s18  }
   0xd   :  { %808 = dma.done.wait [#allocation4], 32768  }
   0xe   :  { %809 = vsyncadd [#allocation4], 4294934528  ;;  %v129_v1 = vld [vmem:[#allocation3 + $0x1e8] sm:$0xff]  ;;  %v128_v3 = vld [vmem:[#allocation3 + $0x1e0] sm:$0xff] }
   0xf   :  { %v257_v2 = vld [vmem:[#allocation3 + $0x5e8] sm:$0xff]  ;;  %390 = vmatprep.subr.mxu0 %v129_v1  ;;  %v256_v4 = vld [vmem:[#allocation3 + $0x5e0] sm:$0xff] }
  0x10   :  { %461 = vmatprep.subr.mxu1 %v257_v2  ;;  %v125_v5 = vld [vmem:[#allocation3 + $0x1c8] sm:$0xff]  ;;  %391 = vmatpush1.msra.mxu0 %v128_v3  ;;  %v124_v7 = vld [vmem:[#allocation3 + $0x1c0] sm:$0xff] }
  0x11   :  { %v253_v6 = vld [vmem:[#allocation3 + $0x5c8] sm:$0xff]  ;;  %462 = vmatpush1.msra.mxu1 %v256_v4  ;;  %v252_v8 = vld [vmem:[#allocation3 + $0x5c0] sm:$0xff]  ;;  %392 = vmatprep.subr.mxu0 %v125_v5 }
  0x12   :  { %v121_v9 = vld [vmem:[#allocation3 + $0x1a8] sm:$0xff]  ;;  %463 = vmatprep.subr.mxu1 %v253_v6  ;;  %v120_v11 = vld [vmem:[#allocation3 + $0x1a0] sm:$0xff]  ;;  %393 = vmatpush1.msra.mxu0 %v124_v7 }
  0x13   :  { %v249_v10 = vld [vmem:[#allocation3 + $0x5a8] sm:$0xff]  ;;  %v248_v12 = vld [vmem:[#allocation3 + $0x5a0] sm:$0xff]  ;;  %464 = vmatpush1.msra.mxu1 %v252_v8  ;;  %394 = vmatprep.subr.mxu0 %v121_v9 }
  0x14   :  { %v117_v13 = vld [vmem:[#allocation3 + $0x188] sm:$0xff]  ;;  %465 = vmatprep.subr.mxu1 %v249_v10  ;;  %v116_v15 = vld [vmem:[#allocation3 + $0x180] sm:$0xff]  ;;  %395 = vmatpush1.msra.mxu0 %v120_v11 }
  0x15   :  { %v245_v14 = vld [vmem:[#allocation3 + $0x588] sm:$0xff]  ;;  %v244_v16 = vld [vmem:[#allocation3 + $0x580] sm:$0xff]  ;;  %466 = vmatpush1.msra.mxu1 %v248_v12  ;;  %396 = vmatprep.subr.mxu0 %v117_v13 }
  0x16   :  { %v113_v17 = vld [vmem:[#allocation3 + $0x168] sm:$0xff]  ;;  %467 = vmatprep.subr.mxu1 %v245_v14  ;;  %v112_v19 = vld [vmem:[#allocation3 + $0x160] sm:$0xff]  ;;  %397 = vmatpush1.msra.mxu0 %v116_v15 }
  0x17   :  { %v241_v18 = vld [vmem:[#allocation3 + $0x568] sm:$0xff]  ;;  %v240_v20 = vld [vmem:[#allocation3 + $0x560] sm:$0xff]  ;;  %468 = vmatpush1.msra.mxu1 %v244_v16  ;;  %398 = vmatprep.subr.mxu0 %v113_v17 }
  0x18   :  { %v109_v21 = vld [vmem:[#allocation3 + $0x148] sm:$0xff]  ;;  %469 = vmatprep.subr.mxu1 %v241_v18  ;;  %v108_v23 = vld [vmem:[#allocation3 + $0x140] sm:$0xff]  ;;  %399 = vmatpush1.msra.mxu0 %v112_v19 }
  0x19   :  { %v237_v22 = vld [vmem:[#allocation3 + $0x548] sm:$0xff]  ;;  %v236_v24 = vld [vmem:[#allocation3 + $0x540] sm:$0xff]  ;;  %470 = vmatpush1.msra.mxu1 %v240_v20  ;;  %400 = vmatprep.subr.mxu0 %v109_v21 }
  0x1a   :  { %v105_v25 = vld [vmem:[#allocation3 + $0x128] sm:$0xff]  ;;  %471 = vmatprep.subr.mxu1 %v237_v22  ;;  %v104_v27 = vld [vmem:[#allocation3 + $0x120] sm:$0xff]  ;;  %401 = vmatpush1.msra.mxu0 %v108_v23 }
  0x1b   :  { %v233_v26 = vld [vmem:[#allocation3 + $0x528] sm:$0xff]  ;;  %v232_v28 = vld [vmem:[#allocation3 + $0x520] sm:$0xff]  ;;  %472 = vmatpush1.msra.mxu1 %v236_v24  ;;  %402 = vmatprep.subr.mxu0 %v105_v25 }
  0x1c   :  { %v101_v29 = vld [vmem:[#allocation3 + $0x108] sm:$0xff]  ;;  %473 = vmatprep.subr.mxu1 %v233_v26  ;;  %v100_v31 = vld [vmem:[#allocation3 + $0x100] sm:$0xff]  ;;  %403 = vmatpush1.msra.mxu0 %v104_v27 }
  0x1d   :  { %v229_v30 = vld [vmem:[#allocation3 + $0x508] sm:$0xff]  ;;  %v228_v32 = vld [vmem:[#allocation3 + $0x500] sm:$0xff]  ;;  %474 = vmatpush1.msra.mxu1 %v232_v28  ;;  %404 = vmatprep.subr.mxu0 %v101_v29 }
  0x1e   :  { %v97_v33 = vld [vmem:[#allocation3 + $0xe8] sm:$0xff]  ;;  %475 = vmatprep.subr.mxu1 %v229_v30  ;;  %v96_v35 = vld [vmem:[#allocation3 + $0xe0] sm:$0xff]  ;;  %405 = vmatpush1.msra.mxu0 %v100_v31  ;;  %v326_v31 = vlaneseq }
  0x1f   :  { %v225_v34 = vld [vmem:[#allocation3 + $0x4e8] sm:$0xff]  ;;  %v224_v36 = vld [vmem:[#allocation3 + $0x4e0] sm:$0xff]  ;;  %476 = vmatpush1.msra.mxu1 %v228_v32  ;;  %406 = vmatprep.subr.mxu0 %v97_v33  ;;  %v815_v32 = vmov 1983009808  }
  0x20   :  { %v93_v37 = vld [vmem:[#allocation3 + $0xc8] sm:$0xff]  ;;  %477 = vmatprep.subr.mxu1 %v225_v34  ;;  %v92_v39 = vld [vmem:[#allocation3 + $0xc0] sm:$0xff]  ;;  %407 = vmatpush1.msra.mxu0 %v96_v35  ;;  %v355_v33 = vunpack.c.l.s4 %v815_v32  ;;  %v247_v32 = vld [vmem:[#allocation3 + $0x598] sm:$0xff] }
  0x21   :  { %v221_v38 = vld [vmem:[#allocation3 + $0x4c8] sm:$0xff]  ;;  %v220_v40 = vld [vmem:[#allocation3 + $0x4c0] sm:$0xff]  ;;  %478 = vmatpush1.msra.mxu1 %v224_v36  ;;  %408 = vmatprep.subr.mxu0 %v93_v37 }
  0x22   :  { %v89_v41 = vld [vmem:[#allocation3 + $0xa8] sm:$0xff]  ;;  %479 = vmatprep.subr.mxu1 %v221_v38  ;;  %v88_v43 = vld [vmem:[#allocation3 + $0xa0] sm:$0xff]  ;;  %409 = vmatpush1.msra.mxu0 %v92_v39 }
  0x23   :  { %v217_v42 = vld [vmem:[#allocation3 + $0x4a8] sm:$0xff]  ;;  %v216_v44 = vld [vmem:[#allocation3 + $0x4a0] sm:$0xff]  ;;  %480 = vmatpush1.msra.mxu1 %v220_v40  ;;  %410 = vmatprep.subr.mxu0 %v89_v41 }
  0x24   :  { %v85_v45 = vld [vmem:[#allocation3 + $0x88] sm:$0xff]  ;;  %481 = vmatprep.subr.mxu1 %v217_v42  ;;  %v84_v47 = vld [vmem:[#allocation3 + $0x80] sm:$0xff]  ;;  %411 = vmatpush1.msra.mxu0 %v88_v43  ;;  %v845_v42 = vshrl.u32 %v326_v31, 7  ;;  %v356_v43 = vunpack.c.0.s8 %v355_v33  ;;  %v119_v31 = vld [vmem:[#allocation3 + $0x198] sm:$0xff] }
  0x25   :  { %v213_v46 = vld [vmem:[#allocation3 + $0x488] sm:$0xff]  ;;  %v212_v48 = vld [vmem:[#allocation3 + $0x480] sm:$0xff]  ;;  %482 = vmatpush1.msra.mxu1 %v216_v44  ;;  %412 = vmatprep.subr.mxu0 %v85_v45  ;;  %v118_v33 = vld [vmem:[#allocation3 + $0x190] sm:$0xff] }
  0x26   :  { %v81_v49 = vld [vmem:[#allocation3 + $0x68] sm:$0xff]  ;;  %483 = vmatprep.subr.mxu1 %v213_v46  ;;  %v80_v51 = vld [vmem:[#allocation3 + $0x60] sm:$0xff]  ;;  %413 = vmatpush1.msra.mxu0 %v84_v47 }
  0x27   :  { %v209_v50 = vld [vmem:[#allocation3 + $0x468] sm:$0xff]  ;;  %v208_v52 = vld [vmem:[#allocation3 + $0x460] sm:$0xff]  ;;  %484 = vmatpush1.msra.mxu1 %v212_v48  ;;  %414 = vmatprep.subr.mxu0 %v81_v49 }
  0x28   :  { %v77_v53 = vld [vmem:[#allocation3 + $0x48] sm:$0xff]  ;;  %485 = vmatprep.subr.mxu1 %v209_v50  ;;  %v76_v55 = vld [vmem:[#allocation3 + $0x40] sm:$0xff]  ;;  %415 = vmatpush1.msra.mxu0 %v80_v51 }
  0x29   :  { %v205_v54 = vld [vmem:[#allocation3 + $0x448] sm:$0xff]  ;;  %v204_v56 = vld [vmem:[#allocation3 + $0x440] sm:$0xff]  ;;  %486 = vmatpush1.msra.mxu1 %v208_v52  ;;  %416 = vmatprep.subr.mxu0 %v77_v53 }
  0x2a   :  { %v73_v57 = vld [vmem:[#allocation3 + $0x28] sm:$0xff]  ;;  %487 = vmatprep.subr.mxu1 %v205_v54  ;;  %v72_v59 = vld [vmem:[#allocation3 + $0x20] sm:$0xff]  ;;  %417 = vmatpush1.msra.mxu0 %v76_v55  ;;  %v848_v54 = vsub.s32 %v356_v43, %v845_v42  ;;  %v238_v43 = vld [vmem:[#allocation3 + $0x550] sm:$0xff] }
  0x2b   :  { %v201_v58 = vld [vmem:[#allocation3 + $0x428] sm:$0xff]  ;;  %v200_v60 = vld [vmem:[#allocation3 + $0x420] sm:$0xff]  ;;  %488 = vmatpush1.msra.mxu1 %v204_v56  ;;  %418 = vmatprep.subr.mxu0 %v73_v57 }
  0x2c   :  { %v69_v61 = vld [vmem:[#allocation3 + $0x8] sm:$0xff]  ;;  %489 = vmatprep.subr.mxu1 %v201_v58  ;;  %v68_v63 = vld [vmem:[#allocation3] sm:$0xff]  ;;  %419 = vmatpush1.msra.mxu0 %v72_v59 }
  0x2d   :  { %v197_v62 = vld [vmem:[#allocation3 + $0x408] sm:$0xff]  ;;  %v196_v0 = vld [vmem:[#allocation3 + $0x400] sm:$0xff]  ;;  %490 = vmatpush1.msra.mxu1 %v200_v60  ;;  %420 = vmatprep.subr.mxu0 %v69_v61 }
  0x2e   :  { %v193_v1 = vld [vmem:[#allocation3 + $0x3e8] sm:$0xff]  ;;  %491 = vmatprep.subr.mxu1 %v197_v62  ;;  %v192_v3 = vld [vmem:[#allocation3 + $0x3e0] sm:$0xff]  ;;  %421 = vmatpush1.msra.mxu0 %v68_v63 }
  0x2f   :  { %v321_v2 = vld [vmem:[#allocation3 + $0x7e8] sm:$0xff]  ;;  %v320_v4 = vld [vmem:[#allocation3 + $0x7e0] sm:$0xff]  ;;  %492 = vmatpush1.msra.mxu1 %v196_v0  ;;  %422 = vmatprep.subr.mxu0 %v193_v1 }
  0x30   :  { %v189_v5 = vld [vmem:[#allocation3 + $0x3c8] sm:$0xff]  ;;  %493 = vmatprep.subr.mxu1 %v321_v2  ;;  %v188_v7 = vld [vmem:[#allocation3 + $0x3c0] sm:$0xff]  ;;  %423 = vmatpush2.msra.mxu0 %v192_v3 }
  0x31   :  { %v317_v6 = vld [vmem:[#allocation3 + $0x7c8] sm:$0xff]  ;;  %v316_v8 = vld [vmem:[#allocation3 + $0x7c0] sm:$0xff]  ;;  %494 = vmatpush2.msra.mxu1 %v320_v4  ;;  %424 = vmatprep.subr.mxu0 %v189_v5 }
  0x32   :  { %v185_v9 = vld [vmem:[#allocation3 + $0x3a8] sm:$0xff]  ;;  %495 = vmatprep.subr.mxu1 %v317_v6  ;;  %v184_v11 = vld [vmem:[#allocation3 + $0x3a0] sm:$0xff]  ;;  %425 = vmatpush2.msra.mxu0 %v188_v7 }
  0x33   :  { %v313_v10 = vld [vmem:[#allocation3 + $0x7a8] sm:$0xff]  ;;  %v312_v12 = vld [vmem:[#allocation3 + $0x7a0] sm:$0xff]  ;;  %496 = vmatpush2.msra.mxu1 %v316_v8  ;;  %426 = vmatprep.subr.mxu0 %v185_v9 }
  0x34   :  { %v181_v13 = vld [vmem:[#allocation3 + $0x388] sm:$0xff]  ;;  %497 = vmatprep.subr.mxu1 %v313_v10  ;;  %v180_v15 = vld [vmem:[#allocation3 + $0x380] sm:$0xff]  ;;  %427 = vmatpush2.msra.mxu0 %v184_v11 }
  0x35   :  { %v309_v14 = vld [vmem:[#allocation3 + $0x788] sm:$0xff]  ;;  %v308_v16 = vld [vmem:[#allocation3 + $0x780] sm:$0xff]  ;;  %498 = vmatpush2.msra.mxu1 %v312_v12  ;;  %428 = vmatprep.subr.mxu0 %v181_v13 }
  0x36   :  { %v177_v17 = vld [vmem:[#allocation3 + $0x368] sm:$0xff]  ;;  %499 = vmatprep.subr.mxu1 %v309_v14  ;;  %v176_v19 = vld [vmem:[#allocation3 + $0x360] sm:$0xff]  ;;  %429 = vmatpush2.msra.mxu0 %v180_v15 }
  0x37   :  { %v305_v18 = vld [vmem:[#allocation3 + $0x768] sm:$0xff]  ;;  %v304_v20 = vld [vmem:[#allocation3 + $0x760] sm:$0xff]  ;;  %500 = vmatpush2.msra.mxu1 %v308_v16  ;;  %430 = vmatprep.subr.mxu0 %v177_v17 }
  0x38   :  { %v173_v21 = vld [vmem:[#allocation3 + $0x348] sm:$0xff]  ;;  %v172_v23 = vld [vmem:[#allocation3 + $0x340] sm:$0xff]  ;;  %501 = vmatprep.subr.mxu1 %v305_v18  ;;  %431 = vmatpush2.msra.mxu0 %v176_v19  ;;  %v131_v18 = vld [vmem:[#allocation3 + $0x1f8] sm:$0xff] }
  0x39   :  { %v301_v22 = vld [vmem:[#allocation3 + $0x748] sm:$0xff]  ;;  %v300_v24 = vld [vmem:[#allocation3 + $0x740] sm:$0xff]  ;;  %502 = vmatpush2.msra.mxu1 %v304_v20  ;;  %432 = vmatprep.subr.mxu0 %v173_v21  ;;  %v259_v20 = vld [vmem:[#allocation3 + $0x5f8] sm:$0xff] }
  0x3a   :  { %v169_v25 = vld [vmem:[#allocation3 + $0x328] sm:$0xff]  ;;  %v168_v27 = vld [vmem:[#allocation3 + $0x320] sm:$0xff]  ;;  %503 = vmatprep.subr.mxu1 %v301_v22  ;;  %433 = vmatpush2.msra.mxu0 %v172_v23  ;;  %v130_v21 = vld [vmem:[#allocation3 + $0x1f0] sm:$0xff] }
  0x3b   :  { %v297_v26 = vld [vmem:[#allocation3 + $0x728] sm:$0xff]  ;;  %v296_v28 = vld [vmem:[#allocation3 + $0x720] sm:$0xff]  ;;  %504 = vmatpush2.msra.mxu1 %v300_v24  ;;  %434 = vmatprep.subr.mxu0 %v169_v25  ;;  %v258_v22 = vld [vmem:[#allocation3 + $0x5f0] sm:$0xff] }
  0x3c   :  { %v165_v29 = vld [vmem:[#allocation3 + $0x308] sm:$0xff]  ;;  %505 = vmatprep.subr.mxu1 %v297_v26  ;;  %v164_v34 = vld [vmem:[#allocation3 + $0x300] sm:$0xff]  ;;  %435 = vmatpush2.msra.mxu0 %v168_v27  ;;  %v127_v23 = vld [vmem:[#allocation3 + $0x1d8] sm:$0xff] }
  0x3d   :  { %v293_v30 = vld [vmem:[#allocation3 + $0x708] sm:$0xff]  ;;  %v292_v35 = vld [vmem:[#allocation3 + $0x700] sm:$0xff]  ;;  %506 = vmatpush2.msra.mxu1 %v296_v28  ;;  %436 = vmatprep.subr.mxu0 %v165_v29  ;;  %v255_v24 = vld [vmem:[#allocation3 + $0x5d8] sm:$0xff] }
  0x3e   :  { %v161_v36 = vld [vmem:[#allocation3 + $0x2e8] sm:$0xff]  ;;  %507 = vmatprep.subr.mxu1 %v293_v30  ;;  %v160_v38 = vld [vmem:[#allocation3 + $0x2e0] sm:$0xff]  ;;  %437 = vmatpush2.msra.mxu0 %v164_v34  ;;  %v126_v25 = vld [vmem:[#allocation3 + $0x1d0] sm:$0xff] }
  0x3f   :  { %v289_v37 = vld [vmem:[#allocation3 + $0x6e8] sm:$0xff]  ;;  %v288_v39 = vld [vmem:[#allocation3 + $0x6e0] sm:$0xff]  ;;  %508 = vmatpush2.msra.mxu1 %v292_v35  ;;  %438 = vmatprep.subr.mxu0 %v161_v36  ;;  %v254_v26 = vld [vmem:[#allocation3 + $0x5d0] sm:$0xff] }
  0x40   :  { %v157_v40 = vld [vmem:[#allocation3 + $0x2c8] sm:$0xff]  ;;  %509 = vmatprep.subr.mxu1 %v289_v37  ;;  %v156_v44 = vld [vmem:[#allocation3 + $0x2c0] sm:$0xff]  ;;  %439 = vmatpush2.msra.mxu0 %v160_v38  ;;  %v123_v27 = vld [vmem:[#allocation3 + $0x1b8] sm:$0xff] }
  0x41   :  { %v285_v41 = vld [vmem:[#allocation3 + $0x6c8] sm:$0xff]  ;;  %v284_v45 = vld [vmem:[#allocation3 + $0x6c0] sm:$0xff]  ;;  %510 = vmatpush2.msra.mxu1 %v288_v39  ;;  %440 = vmatprep.subr.mxu0 %v157_v40  ;;  %v251_v28 = vld [vmem:[#allocation3 + $0x5b8] sm:$0xff] }
  0x42   :  { %v153_v46 = vld [vmem:[#allocation3 + $0x2a8] sm:$0xff]  ;;  %511 = vmatprep.subr.mxu1 %v285_v41  ;;  %v152_v48 = vld [vmem:[#allocation3 + $0x2a0] sm:$0xff]  ;;  %441 = vmatpush2.msra.mxu0 %v156_v44  ;;  %v122_v29 = vld [vmem:[#allocation3 + $0x1b0] sm:$0xff] }
  0x43   :  { %v281_v47 = vld [vmem:[#allocation3 + $0x6a8] sm:$0xff]  ;;  %v280_v49 = vld [vmem:[#allocation3 + $0x6a0] sm:$0xff]  ;;  %512 = vmatpush2.msra.mxu1 %v284_v45  ;;  %442 = vmatprep.subr.mxu0 %v153_v46  ;;  %v250_v30 = vld [vmem:[#allocation3 + $0x5b0] sm:$0xff] }
  0x44   :  { %v149_v50 = vld [vmem:[#allocation3 + $0x288] sm:$0xff]  ;;  %v754_v52 = vld [vmem:[#allocation2 + $0x10] ss:$-16 sps:$4 sm:$0xff]   ;;  %513 = vmatprep.subr.mxu1 %v281_v47  ;;  %443 = vmatpush2.msra.mxu0 %v152_v48  ;;  %v758_v59 = vld [vmem:[#allocation2 + $0x14] ss:$-16 sps:$4 sm:$0xff]  }
  0x45   :  { %v277_v51 = vld [vmem:[#allocation3 + $0x688] sm:$0xff]  ;;  %v148_v55 = vld [vmem:[#allocation3 + $0x280] sm:$0xff]  ;;  %514 = vmatpush2.msra.mxu1 %v280_v49  ;;  %444 = vmatprep.subr.mxu0 %v149_v50  ;;  %v360_v1 = vrot.slane %v754_v52, %v848_v54  ;;  %v367_v7 = vrot.slane %v758_v59, %v848_v54  ;;  %v246_v34 = vld [vmem:[#allocation3 + $0x590] sm:$0xff] }
  0x46   :  { %v756_v53 = vld [vmem:[#allocation2 + $0x18] ss:$-16 sps:$4 sm:$0xff]   ;;  %v276_v56 = vld [vmem:[#allocation3 + $0x680] sm:$0xff]  ;;  %v759_v60 = vld [vmem:[#allocation2 + $0x1c] ss:$-16 sps:$4 sm:$0xff]   ;;  %515 = vmatprep.subr.mxu1 %v277_v51  ;;  %445 = vmatpush2.msra.mxu0 %v148_v55 }
  0x47   :  { %v145_v57 = vld [vmem:[#allocation3 + $0x268] sm:$0xff]  ;;  %v144_v61 = vld [vmem:[#allocation3 + $0x260] sm:$0xff]  ;;  %516 = vmatpush2.msra.mxu1 %v276_v56  ;;  %v374_v2 = vrot.slane %v756_v53, %v848_v54  ;;  %v381_v8 = vrot.slane %v759_v60, %v848_v54  ;;  %v115_v35 = vld [vmem:[#allocation3 + $0x178] sm:$0xff] }
  0x48   :  { %v273_v58 = vld [vmem:[#allocation3 + $0x668] sm:$0xff]  ;;  %v272_v62 = vld [vmem:[#allocation3 + $0x660] sm:$0xff]  ;;  %446 = vmatprep.subr.mxu0 %v145_v57  ;;  %v243_v36 = vld [vmem:[#allocation3 + $0x578] sm:$0xff] }
  0x49   :  { %v141_v63 = vld [vmem:[#allocation3 + $0x248] sm:$0xff]  ;;  %517 = vmatprep.subr.mxu1 %v273_v58  ;;  %v140_v3 = vld [vmem:[#allocation3 + $0x240] sm:$0xff]  ;;  %447 = vmatpush2.msra.mxu0 %v144_v61  ;;  %v854_v13 = vcombine.high %v360_v1, %v374_v2  ;;  %v856_v15 = vcombine.low %v360_v1, %v374_v2  ;;  %v858_v17 = vcombine.high %v367_v7, %v381_v8  ;;  %v114_v37 = vld [vmem:[#allocation3 + $0x170] sm:$0xff] }
  0x4a   :  { %v269_v0 = vld [vmem:[#allocation3 + $0x648] sm:$0xff]  ;;  %v268_v4 = vld [vmem:[#allocation3 + $0x640] sm:$0xff]  ;;  %518 = vmatpush2.msra.mxu1 %v272_v62  ;;  %448 = vmatprep.subr.mxu0 %v141_v63  ;;  %v860_v19 = vcombine.low %v367_v7, %v381_v8  ;;  %v242_v38 = vld [vmem:[#allocation3 + $0x570] sm:$0xff] }
  0x4b   :  { %v137_v5 = vld [vmem:[#allocation3 + $0x228] sm:$0xff]  ;;  %519 = vmatprep.subr.mxu1 %v269_v0  ;;  %v136_v9 = vld [vmem:[#allocation3 + $0x220] sm:$0xff]  ;;  %449 = vmatpush2.msra.mxu0 %v140_v3  ;;  %v111_v39 = vld [vmem:[#allocation3 + $0x158] sm:$0xff] }
  0x4c   :  { %v265_v6 = vld [vmem:[#allocation3 + $0x628] sm:$0xff]  ;;  %v264_v10 = vld [vmem:[#allocation3 + $0x620] sm:$0xff]  ;;  %520 = vmatpush2.msra.mxu1 %v268_v4  ;;  %450 = vmatprep.subr.mxu0 %v137_v5  ;;  %v239_v40 = vld [vmem:[#allocation3 + $0x558] sm:$0xff] }
  0x4d   :  { %v133_v11 = vld [vmem:[#allocation3 + $0x208] sm:$0xff]  ;;  %521 = vmatprep.subr.mxu1 %v265_v6  ;;  %v132_v14 = vld [vmem:[#allocation3 + $0x200] sm:$0xff]  ;;  %451 = vmatpush2.msra.mxu0 %v136_v9  ;;  %v110_v41 = vld [vmem:[#allocation3 + $0x150] sm:$0xff] }
  0x4e   :  { %v261_v12 = vld [vmem:[#allocation3 + $0x608] sm:$0xff]  ;;  %522 = vmatpush2.msra.mxu1 %v264_v10  ;;  %v260_v16 = vld [vmem:[#allocation3 + $0x600] sm:$0xff]  ;;  %452 = vmatprep.subr.mxu0 %v133_v11  ;;  %v107_v44 = vld [vmem:[#allocation3 + $0x138] sm:$0xff] }
  0x4f   :  { %523 = vmatprep.subr.mxu1 %v261_v12  ;;  %453 = vmatpush2.msra.mxu0 %v132_v14  ;;  %v235_v45 = vld [vmem:[#allocation3 + $0x538] sm:$0xff]  ;;  %v106_v46 = vld [vmem:[#allocation3 + $0x130] sm:$0xff] }
  0x50   :  { %454 = vmatprep.mubr.f32.mxu0 %v854_v13  ;;  %524 = vmatpush2.msra.mxu1 %v260_v16  ;;  %v234_v47 = vld [vmem:[#allocation3 + $0x530] sm:$0xff]  ;;  %v103_v48 = vld [vmem:[#allocation3 + $0x118] sm:$0xff] }
  0x51   :  { %455 = vmatmul.mubr.f32.vlgmr.msra.gmra.mxu0 %v856_v15  ;;  %525 = vmatprep.mubr.f32.mxu1 %v858_v17  ;;  %v231_v49 = vld [vmem:[#allocation3 + $0x518] sm:$0xff]  ;;  %v102_v50 = vld [vmem:[#allocation3 + $0x110] sm:$0xff] }
  0x52   :  { %532 = vmatprep.subr.mxu0 %v131_v18  ;;  %603 = vmatprep.subr.mxu1 %v259_v20  ;;  %v230_v51 = vld [vmem:[#allocation3 + $0x510] sm:$0xff]  ;;  %v99_v52 = vld [vmem:[#allocation3 + $0xf8] sm:$0xff] }
  0x53   :  { %526 = vmatmul.mubr.f32.vlgmr.msra.gmra.mxu1 %v860_v19  ;;  %533 = vmatpush1.msra.mxu0 %v130_v21  ;;  %v227_v53 = vld [vmem:[#allocation3 + $0x4f8] sm:$0xff]  ;;  %v98_v55 = vld [vmem:[#allocation3 + $0xf0] sm:$0xff] }
  0x54   :  { %604 = vmatpush1.msra.mxu1 %v258_v22  ;;  %534 = vmatprep.subr.mxu0 %v127_v23  ;;  %v226_v56 = vld [vmem:[#allocation3 + $0x4f0] sm:$0xff]  ;;  %v95_v57 = vld [vmem:[#allocation3 + $0xd8] sm:$0xff] }
  0x55   :  { %605 = vmatprep.subr.mxu1 %v255_v24  ;;  %535 = vmatpush1.msra.mxu0 %v126_v25  ;;  %v223_v58 = vld [vmem:[#allocation3 + $0x4d8] sm:$0xff]  ;;  %v94_v59 = vld [vmem:[#allocation3 + $0xd0] sm:$0xff] }
  0x56   :  { %606 = vmatpush1.msra.mxu1 %v254_v26  ;;  %536 = vmatprep.subr.mxu0 %v123_v27  ;;  %v222_v60 = vld [vmem:[#allocation3 + $0x4d0] sm:$0xff]  ;;  %v91_v61 = vld [vmem:[#allocation3 + $0xb8] sm:$0xff] }
  0x57   :  { %607 = vmatprep.subr.mxu1 %v251_v28  ;;  %537 = vmatpush1.msra.mxu0 %v122_v29  ;;  %v219_v62 = vld [vmem:[#allocation3 + $0x4b8] sm:$0xff]  ;;  %v90_v63 = vld [vmem:[#allocation3 + $0xb0] sm:$0xff] }
  0x58   :  { %608 = vmatpush1.msra.mxu1 %v250_v30  ;;  %538 = vmatprep.subr.mxu0 %v119_v31  ;;  %v218_v0 = vld [vmem:[#allocation3 + $0x4b0] sm:$0xff]  ;;  %v87_v1 = vld [vmem:[#allocation3 + $0x98] sm:$0xff] }
  0x59   :  { %609 = vmatprep.subr.mxu1 %v247_v32  ;;  %539 = vmatpush1.msra.mxu0 %v118_v33  ;;  %v215_v2 = vld [vmem:[#allocation3 + $0x498] sm:$0xff]  ;;  %v86_v3 = vld [vmem:[#allocation3 + $0x90] sm:$0xff] }
  0x5a   :  { %610 = vmatpush1.msra.mxu1 %v246_v34  ;;  %540 = vmatprep.subr.mxu0 %v115_v35  ;;  %v214_v4 = vld [vmem:[#allocation3 + $0x490] sm:$0xff]  ;;  %v83_v5 = vld [vmem:[#allocation3 + $0x78] sm:$0xff] }
  0x5b   :  { %611 = vmatprep.subr.mxu1 %v243_v36  ;;  %541 = vmatpush1.msra.mxu0 %v114_v37  ;;  %v211_v6 = vld [vmem:[#allocation3 + $0x478] sm:$0xff]  ;;  %v82_v7 = vld [vmem:[#allocation3 + $0x70] sm:$0xff] }
  0x5c   :  { %612 = vmatpush1.msra.mxu1 %v242_v38  ;;  %542 = vmatprep.subr.mxu0 %v111_v39  ;;  %v210_v8 = vld [vmem:[#allocation3 + $0x470] sm:$0xff]  ;;  %v79_v9 = vld [vmem:[#allocation3 + $0x58] sm:$0xff] }
  0x5d   :  { %613 = vmatprep.subr.mxu1 %v239_v40  ;;  %543 = vmatpush1.msra.mxu0 %v110_v41  ;;  %v207_v10 = vld [vmem:[#allocation3 + $0x458] sm:$0xff]  ;;  %v78_v11 = vld [vmem:[#allocation3 + $0x50] sm:$0xff] }
  0x5e   :  { %614 = vmatpush1.msra.mxu1 %v238_v43  ;;  %544 = vmatprep.subr.mxu0 %v107_v44  ;;  %v206_v12 = vld [vmem:[#allocation3 + $0x450] sm:$0xff]  ;;  %v75_v14 = vld [vmem:[#allocation3 + $0x38] sm:$0xff] }
  0x5f   :  { %615 = vmatprep.subr.mxu1 %v235_v45  ;;  %545 = vmatpush1.msra.mxu0 %v106_v46  ;;  %v203_v16 = vld [vmem:[#allocation3 + $0x438] sm:$0xff]  ;;  %v74_v18 = vld [vmem:[#allocation3 + $0x30] sm:$0xff] }
  0x60   :  { %616 = vmatpush1.msra.mxu1 %v234_v47  ;;  %546 = vmatprep.subr.mxu0 %v103_v48  ;;  %v202_v20 = vld [vmem:[#allocation3 + $0x430] sm:$0xff]  ;;  %v71_v21 = vld [vmem:[#allocation3 + $0x18] sm:$0xff] }
  0x61   :  { %617 = vmatprep.subr.mxu1 %v231_v49  ;;  %547 = vmatpush1.msra.mxu0 %v102_v50  ;;  %v199_v22 = vld [vmem:[#allocation3 + $0x418] sm:$0xff]  ;;  %v70_v23 = vld [vmem:[#allocation3 + $0x10] sm:$0xff] }
  0x62   :  { %618 = vmatpush1.msra.mxu1 %v230_v51  ;;  %548 = vmatprep.subr.mxu0 %v99_v52  ;;  %v198_v24 = vld [vmem:[#allocation3 + $0x410] sm:$0xff]  ;;  %v195_v25 = vld [vmem:[#allocation3 + $0x3f8] sm:$0xff] }
  0x63   :  { %619 = vmatprep.subr.mxu1 %v227_v53  ;;  %549 = vmatpush1.msra.mxu0 %v98_v55  ;;  %v323_v26 = vld [vmem:[#allocation3 + $0x7f8] sm:$0xff]  ;;  %v194_v27 = vld [vmem:[#allocation3 + $0x3f0] sm:$0xff] }
  0x64   :  { %620 = vmatpush1.msra.mxu1 %v226_v56  ;;  %550 = vmatprep.subr.mxu0 %v95_v57  ;;  %v322_v28 = vld [vmem:[#allocation3 + $0x7f0] sm:$0xff]  ;;  %v191_v29 = vld [vmem:[#allocation3 + $0x3d8] sm:$0xff] }
  0x65   :  { %621 = vmatprep.subr.mxu1 %v223_v58  ;;  %551 = vmatpush1.msra.mxu0 %v94_v59  ;;  %v319_v30 = vld [vmem:[#allocation3 + $0x7d8] sm:$0xff]  ;;  %v190_v31 = vld [vmem:[#allocation3 + $0x3d0] sm:$0xff] }
  0x66   :  { %622 = vmatpush1.msra.mxu1 %v222_v60  ;;  %552 = vmatprep.subr.mxu0 %v91_v61  ;;  %v318_v32 = vld [vmem:[#allocation3 + $0x7d0] sm:$0xff]  ;;  %v187_v33 = vld [vmem:[#allocation3 + $0x3b8] sm:$0xff] }
  0x67   :  { %623 = vmatprep.subr.mxu1 %v219_v62  ;;  %553 = vmatpush1.msra.mxu0 %v90_v63  ;;  %v315_v34 = vld [vmem:[#allocation3 + $0x7b8] sm:$0xff]  ;;  %v186_v35 = vld [vmem:[#allocation3 + $0x3b0] sm:$0xff] }
  0x68   :  { %624 = vmatpush1.msra.mxu1 %v218_v0  ;;  %554 = vmatprep.subr.mxu0 %v87_v1  ;;  %v314_v36 = vld [vmem:[#allocation3 + $0x7b0] sm:$0xff]  ;;  %v183_v37 = vld [vmem:[#allocation3 + $0x398] sm:$0xff] }
  0x69   :  { %625 = vmatprep.subr.mxu1 %v215_v2  ;;  %555 = vmatpush1.msra.mxu0 %v86_v3  ;;  %v311_v38 = vld [vmem:[#allocation3 + $0x798] sm:$0xff]  ;;  %v182_v39 = vld [vmem:[#allocation3 + $0x390] sm:$0xff] }
  0x6a   :  { %626 = vmatpush1.msra.mxu1 %v214_v4  ;;  %556 = vmatprep.subr.mxu0 %v83_v5  ;;  %v310_v40 = vld [vmem:[#allocation3 + $0x790] sm:$0xff]  ;;  %v179_v41 = vld [vmem:[#allocation3 + $0x378] sm:$0xff] }
  0x6b   :  { %627 = vmatprep.subr.mxu1 %v211_v6  ;;  %557 = vmatpush1.msra.mxu0 %v82_v7  ;;  %v307_v43 = vld [vmem:[#allocation3 + $0x778] sm:$0xff]  ;;  %v178_v44 = vld [vmem:[#allocation3 + $0x370] sm:$0xff] }
  0x6c   :  { %628 = vmatpush1.msra.mxu1 %v210_v8  ;;  %558 = vmatprep.subr.mxu0 %v79_v9  ;;  %v306_v45 = vld [vmem:[#allocation3 + $0x770] sm:$0xff]  ;;  %v175_v46 = vld [vmem:[#allocation3 + $0x358] sm:$0xff] }
  0x6d   :  { %629 = vmatprep.subr.mxu1 %v207_v10  ;;  %559 = vmatpush1.msra.mxu0 %v78_v11  ;;  %v303_v47 = vld [vmem:[#allocation3 + $0x758] sm:$0xff]  ;;  %v174_v48 = vld [vmem:[#allocation3 + $0x350] sm:$0xff] }
  0x6e   :  { %630 = vmatpush1.msra.mxu1 %v206_v12  ;;  %560 = vmatprep.subr.mxu0 %v75_v14  ;;  %v302_v49 = vld [vmem:[#allocation3 + $0x750] sm:$0xff]  ;;  %v171_v50 = vld [vmem:[#allocation3 + $0x338] sm:$0xff] }
  0x6f   :  { %631 = vmatprep.subr.mxu1 %v203_v16  ;;  %561 = vmatpush1.msra.mxu0 %v74_v18  ;;  %v299_v51 = vld [vmem:[#allocation3 + $0x738] sm:$0xff]  ;;  %v170_v52 = vld [vmem:[#allocation3 + $0x330] sm:$0xff] }
  0x70   :  { %632 = vmatpush1.msra.mxu1 %v202_v20  ;;  %562 = vmatprep.subr.mxu0 %v71_v21  ;;  %v298_v53 = vld [vmem:[#allocation3 + $0x730] sm:$0xff]  ;;  %v167_v55 = vld [vmem:[#allocation3 + $0x318] sm:$0xff] }
  0x71   :  { %633 = vmatprep.subr.mxu1 %v199_v22  ;;  %563 = vmatpush1.msra.mxu0 %v70_v23  ;;  %v295_v56 = vld [vmem:[#allocation3 + $0x718] sm:$0xff]  ;;  %v166_v57 = vld [vmem:[#allocation3 + $0x310] sm:$0xff] }
  0x72   :  { %634 = vmatpush1.msra.mxu1 %v198_v24  ;;  %564 = vmatprep.subr.mxu0 %v195_v25  ;;  %v294_v58 = vld [vmem:[#allocation3 + $0x710] sm:$0xff]  ;;  %v163_v59 = vld [vmem:[#allocation3 + $0x2f8] sm:$0xff] }
  0x73   :  { %635 = vmatprep.subr.mxu1 %v323_v26  ;;  %565 = vmatpush2.msra.mxu0 %v194_v27  ;;  %v291_v60 = vld [vmem:[#allocation3 + $0x6f8] sm:$0xff]  ;;  %v162_v61 = vld [vmem:[#allocation3 + $0x2f0] sm:$0xff] }
  0x74   :  { %636 = vmatpush2.msra.mxu1 %v322_v28  ;;  %566 = vmatprep.subr.mxu0 %v191_v29  ;;  %v290_v62 = vld [vmem:[#allocation3 + $0x6f0] sm:$0xff]  ;;  %v159_v63 = vld [vmem:[#allocation3 + $0x2d8] sm:$0xff] }
  0x75   :  { %637 = vmatprep.subr.mxu1 %v319_v30  ;;  %567 = vmatpush2.msra.mxu0 %v190_v31  ;;  %v287_v0 = vld [vmem:[#allocation3 + $0x6d8] sm:$0xff]  ;;  %v158_v1 = vld [vmem:[#allocation3 + $0x2d0] sm:$0xff]  ;;  %v328_v31 = vsub.s32 0, %v845_v42 }
  0x76   :  { %638 = vmatpush2.msra.mxu1 %v318_v32  ;;  %568 = vmatprep.subr.mxu0 %v187_v33  ;;  %v286_v2 = vld [vmem:[#allocation3 + $0x6d0] sm:$0xff]  ;;  %v155_v3 = vld [vmem:[#allocation3 + $0x2b8] sm:$0xff]  ;;  %v324_v32 = vld [vmem:[%s886_s2] sm:$0xf]  ;;  %v332_v33 = vsub.s32 1, %v845_v42 }
  0x77   :  { %639 = vmatprep.subr.mxu1 %v315_v34  ;;  %569 = vmatpush2.msra.mxu0 %v186_v35  ;;  %v283_v4 = vld [vmem:[#allocation3 + $0x6b8] sm:$0xff]  ;;  %v154_v5 = vld [vmem:[#allocation3 + $0x2b0] sm:$0xff]  ;;  %v329_v35 = vrot.slane %v324_v32, %v328_v31 }
  0x78   :  { %640 = vmatpush2.msra.mxu1 %v314_v36  ;;  %570 = vmatprep.subr.mxu0 %v183_v37  ;;  %v282_v6 = vld [vmem:[#allocation3 + $0x6b0] sm:$0xff]  ;;  %v151_v7 = vld [vmem:[#allocation3 + $0x298] sm:$0xff]  ;;  %v333_v36 = vrot.slane %v324_v32, %v332_v33 }
  0x79   :  { %641 = vmatprep.subr.mxu1 %v311_v38  ;;  %571 = vmatpush2.msra.mxu0 %v182_v39  ;;  %v279_v8 = vld [vmem:[#allocation3 + $0x698] sm:$0xff]  ;;  %v150_v9 = vld [vmem:[#allocation3 + $0x290] sm:$0xff]  ;;  %v336_v38 = vsub.s32 2, %v845_v42 }
  0x7a   :  { %642 = vmatpush2.msra.mxu1 %v310_v40  ;;  %572 = vmatprep.subr.mxu0 %v179_v41  ;;  %v278_v10 = vld [vmem:[#allocation3 + $0x690] sm:$0xff]  ;;  %v147_v11 = vld [vmem:[#allocation3 + $0x278] sm:$0xff] }
  0x7b   :  { %643 = vmatprep.subr.mxu1 %v307_v43  ;;  %573 = vmatpush2.msra.mxu0 %v178_v44  ;;  %v275_v12 = vld [vmem:[#allocation3 + $0x678] sm:$0xff]  ;;  %v146_v14 = vld [vmem:[#allocation3 + $0x270] sm:$0xff]  ;;  %v337_v40 = vrot.slane %v324_v32, %v336_v38 }
  0x7c   :  { %644 = vmatpush2.msra.mxu1 %v306_v45  ;;  %574 = vmatprep.subr.mxu0 %v175_v46  ;;  %v274_v16 = vld [vmem:[#allocation3 + $0x670] sm:$0xff]  ;;  %v143_v18 = vld [vmem:[#allocation3 + $0x258] sm:$0xff] }
  0x7d   :  { %645 = vmatprep.subr.mxu1 %v303_v47  ;;  %575 = vmatpush2.msra.mxu0 %v174_v48  ;;  %v271_v20 = vld [vmem:[#allocation3 + $0x658] sm:$0xff]  ;;  %v142_v21 = vld [vmem:[#allocation3 + $0x250] sm:$0xff] }
  0x7e   :  { %646 = vmatpush2.msra.mxu1 %v302_v49  ;;  %576 = vmatprep.subr.mxu0 %v171_v50  ;;  %v270_v22 = vld [vmem:[#allocation3 + $0x650] sm:$0xff]  ;;  %v139_v23 = vld [vmem:[#allocation3 + $0x238] sm:$0xff] }
  0x7f   :  { %647 = vmatprep.subr.mxu1 %v299_v51  ;;  %577 = vmatpush2.msra.mxu0 %v170_v52  ;;  %v267_v24 = vld [vmem:[#allocation3 + $0x638] sm:$0xff]  ;;  %v138_v25 = vld [vmem:[#allocation3 + $0x230] sm:$0xff] }
  0x80   :  { %648 = vmatpush2.msra.mxu1 %v298_v53  ;;  %578 = vmatprep.subr.mxu0 %v167_v55  ;;  %v266_v26 = vld [vmem:[#allocation3 + $0x630] sm:$0xff]  ;;  %v135_v27 = vld [vmem:[#allocation3 + $0x218] sm:$0xff] }
  0x81   :  { %649 = vmatprep.subr.mxu1 %v295_v56  ;;  %579 = vmatpush2.msra.mxu0 %v166_v57  ;;  %v263_v28 = vld [vmem:[#allocation3 + $0x618] sm:$0xff]  ;;  %v134_v29 = vld [vmem:[#allocation3 + $0x210] sm:$0xff] }
  0x82   :  { %650 = vmatpush2.msra.mxu1 %v294_v58  ;;  %580 = vmatprep.subr.mxu0 %v163_v59  ;;  %v262_v30 = vld [vmem:[#allocation3 + $0x610] sm:$0xff] }
  0x83   :  { %651 = vmatprep.subr.mxu1 %v291_v60  ;;  %581 = vmatpush2.msra.mxu0 %v162_v61 }
  0x84   :  { %652 = vmatpush2.msra.mxu1 %v290_v62  ;;  %582 = vmatprep.subr.mxu0 %v159_v63 }
  0x85   :  { %653 = vmatprep.subr.mxu1 %v287_v0  ;;  %583 = vmatpush2.msra.mxu0 %v158_v1 }
  0x86   :  { %654 = vmatpush2.msra.mxu1 %v286_v2  ;;  %584 = vmatprep.subr.mxu0 %v155_v3 }
  0x87   :  { %655 = vmatprep.subr.mxu1 %v283_v4  ;;  %585 = vmatpush2.msra.mxu0 %v154_v5 }
  0x88   :  { %656 = vmatpush2.msra.mxu1 %v282_v6  ;;  %586 = vmatprep.subr.mxu0 %v151_v7 }
  0x89   :  { %657 = vmatprep.subr.mxu1 %v279_v8  ;;  %587 = vmatpush2.msra.mxu0 %v150_v9 }
  0x8a   :  { %658 = vmatpush2.msra.mxu1 %v278_v10  ;;  %588 = vmatprep.subr.mxu0 %v147_v11 }
  0x8b   :  { %659 = vmatprep.subr.mxu1 %v275_v12  ;;  %589 = vmatpush2.msra.mxu0 %v146_v14 }
  0x8c   :  { %660 = vmatpush2.msra.mxu1 %v274_v16  ;;  %590 = vmatprep.subr.mxu0 %v143_v18 }
  0x8d   :  { %661 = vmatprep.subr.mxu1 %v271_v20  ;;  %591 = vmatpush2.msra.mxu0 %v142_v21 }
  0x8e   :  { %662 = vmatpush2.msra.mxu1 %v270_v22  ;;  %592 = vmatprep.subr.mxu0 %v139_v23 }
  0x8f   :  { %663 = vmatprep.subr.mxu1 %v267_v24  ;;  %593 = vmatpush2.msra.mxu0 %v138_v25 }
  0x90   :  { %664 = vmatpush2.msra.mxu1 %v266_v26  ;;  %594 = vmatprep.subr.mxu0 %v135_v27 }
  0x91   :  { %665 = vmatprep.subr.mxu1 %v263_v28  ;;  %595 = vmatpush2.msra.mxu0 %v134_v29 }
  0x92   :  { %596 = vmatprep.mubr.f32.mxu0 %v854_v13  ;;  %666 = vmatpush2.msra.mxu1 %v262_v30 }
  0x93   :  { %667 = vmatprep.mubr.f32.mxu1 %v858_v17  ;;  %597 = vmatmul.mubr.f32.vlgmr.msra.gmra.mxu0 %v856_v15  ;;  %v340_v15 = vsub.s32 3, %v845_v42 }
  0x94   :  { %668 = vmatmul.mubr.f32.vlgmr.msra.gmra.mxu1 %v860_v19 }
  0x95   :  { %v341_v44 = vrot.slane %v324_v32, %v340_v15 }
 0x111   :  { %v456_v34 = vpop.f32.mrf.mxu0 }
 0x112   :  { %v457_v17 = vadd.f32 %v456_v34, %v329_v35 }
 0x113   :  { %v527_v37 = vpop.f32.mrf.mxu1  ;;  %v458_v13 = vpop.f32.mrf.mxu0 }
 0x114   :  { %v459_v39 = vadd.f32 %v458_v13, %v333_v36  ;;  %v528_v41 = vadd.f32 %v527_v37, %v457_v17 }
 0x115   :  { %v529_v19 = vpop.f32.mrf.mxu1 }
 0x116   :  { %v530_v43 = vadd.f32 %v529_v19, %v459_v39  ;;  %760 = vtanh.f32 %v528_v41 }
 0x118   :  { %762 = vtanh.f32 %v530_v43 }
 0x123   :  { %v761_v53 = vpop.eup %760 }
 0x125   :  { %v763_v55 = vpop.eup %762 }
 0x126   :  { %v682_v56 = vcombine.low %v761_v53, %v763_v55  ;;  %v683_v57 = vcombine.high %v761_v53, %v763_v55 }
 0x128   :  { %v692_v61 = vrot.slane %v682_v56, %v848_v54  ;;  %v699_v62 = vrot.slane %v683_v57, %v848_v54 }
 0x153   :  { %v598_v45 = vpop.f32.mrf.mxu0 }
 0x154   :  { %v669_v46 = vpop.f32.mrf.mxu1  ;;  %v599_v47 = vadd.f32 %v598_v45, %v337_v40 }
 0x155   :  { %v600_v48 = vpop.f32.mrf.mxu0 }
 0x156   :  { %v670_v49 = vadd.f32 %v669_v46, %v599_v47  ;;  %v601_v50 = vadd.f32 %v600_v48, %v341_v44  ;;  %v671_v51 = vpop.f32.mrf.mxu1 }
 0x158   :  { %v672_v52 = vadd.f32 %v671_v51, %v601_v50  ;;  %764 = vtanh.f32 %v670_v49 }
 0x15a   :  { %766 = vtanh.f32 %v672_v52 }
 0x165   :  { %v765_v42 = vpop.eup %764 }
 0x167   :  { %v767_v58 = vpop.eup %766 }
 0x168   :  { %v684_v59 = vcombine.low %v765_v42, %v767_v58  ;;  %v685_v60 = vcombine.high %v765_v42, %v767_v58 }
 0x16a   :  { %v706_v63 = vrot.slane %v684_v59, %v848_v54  ;;  %v713_v0 = vrot.slane %v685_v60, %v848_v54 }
 0x16c   :  { %v714_v1 = vcombine.low %v692_v61, %v706_v63  ;;  %v715_v2 = vcombine.high %v692_v61, %v706_v63  ;;  %v716_v3 = vcombine.low %v699_v62, %v713_v0  ;;  %v717_v4 = vcombine.high %v699_v62, %v713_v0 }
 0x16e   :  { %722 = vst [vmem:[#allocation6] sm:$0xff] %v714_v1  ;;  %723 = vst [vmem:[#allocation6 + $0x8] sm:$0xff] %v715_v2 }
 0x16f   :  { %724 = vst [vmem:[#allocation6 + $0x10] sm:$0xff] %v716_v3  ;;  %725 = vst [vmem:[#allocation6 + $0x18] sm:$0xff] %v717_v4 }
 0x170   :  { %730 = vsyncadd [#allocation5], 384  ;;  %s816_s2 = smov [#allocation6]  }
 0x171   :  { %s731_s21 = sshll.u32 %s816_s2, 4  ;;  %s732_s21 = int_to_ptr.vmem [resolvable:$true] %s731_s21 }
 0x172   :  { %s788_s22 = scalar_lea.vmem %s732_s21, 128  ;;  %s792_s23 = scalar_lea.vmem %s732_s21, 512 }
 0x173   :  { %p789_p5 = scmp.ne.s32.totalorder %s732_s21, %s788_s22  ;;  %p793_p6 = scmp.lt.s32.totalorder %s732_s21, %s732_s21 }
 0x174   :  { %p794_p7 = scmp.lt.s32.totalorder %s792_s23, %s788_s22 }
 0x176   :  { %p795_p8 = por %p794_p7, %p793_p6 }
 0x178   :  { %p796_p9 = pnand %p795_p8, %p789_p5 }
 0x17a   :  { %799 = shalt.err (!%p796_p9)
}
 0x17b   :  { %s817_s24 = smov 128   ;;  %s818_s25 = smov 8  }
 0x17c   :  { %737 = dma.vmem_to_hbm [thread:$0]  %s732_s21, 128, %s887_s3, [#allocation5], %s817_s24, %s817_s24, %s818_s25  }
 0x17d   :  { %810 = dma.done.wait [#allocation5], 512  }
 0x17e   :  { %811 = vsyncadd [#allocation5], 4294966784 }
 0x17f   :  { %741 = vsyncpa [#allocation4], 1 }
 0x180   :  { %742 = vsyncpa [#allocation5], 1 }

</bundles_post_ra>
